<compile_context>
chip_gen: v6e
topology: v6e:2x2x1
jax: 0.10.0
libtpu: 0.0.40
codegen_flags: <defaults>
</compile_context>

<pallas_src>
import jax
import jax.numpy as jnp
from jax.experimental import pallas as pl
from jax.experimental.pallas import tpu as pltpu

NUM_HEADS = 8
_NEG_BIG = -1e30   # pad-lane logit bias -> f32 exp() underflows to exactly 0
_TILE_CAP = 2048   # max batch rows per grid step (working set still << VMEM)


def _fused_kernel(audio_ref, a_ref, c_ref, w2_ref, b2_ref, out_ref):
    f32 = jnp.float32
    audio = audio_ref[...]                                        # (TB, E) bf16

    # h1 = relu(audio @ A + c)   -- bf16 operands, f32 MXU accumulation
    h1 = jnp.dot(audio, a_ref[...], preferred_element_type=f32) + c_ref[...]
    h1 = jnp.maximum(h1, 0.0)

    # logits over the lane-padded output (pad columns carry a -1e30 f32 bias)
    logits = jnp.dot(h1.astype(jnp.bfloat16), w2_ref[...],
                     preferred_element_type=f32) + b2_ref[...]

    # Row softmax in f32; padded lanes contribute exp(~-1e30) == 0.  Denominator
    # reciprocal goes to the EUP (approx vrcp), the normalize is a VPU multiply.
    m = jnp.max(logits, axis=1, keepdims=True)
    e = jnp.exp(logits - m)
    inv = pl.reciprocal(jnp.sum(e, axis=1, keepdims=True), approx=True)
    out_ref[...] = (e * inv).astype(out_ref.dtype)                # bf16 store


def fold_params(p):
    """One-time host-side algebraic fold of the static module weights (f32)."""
    E = p["wv"].shape[0]
    hidden = p["w1"].shape[1]
    out_dim = p["w2"].shape[1]
    out_pad = max(128, ((out_dim + 127) // 128) * 128)

    wvo = p["wv"] @ p["wo"]                              # (E, E)
    bvo = p["b_in"][2:3] @ p["wo"] + p["bo"]             # (1, E)
    a = wvo @ p["w1"][:E] + p["w1"][E:]                  # (E, hidden)
    c = bvo @ p["w1"][:E] + p["b1"]                      # (1, hidden)

    w2p = jnp.zeros((hidden, out_pad), jnp.float32).at[:, :out_dim].set(p["w2"])
    b2p = jnp.full((1, out_pad), _NEG_BIG, jnp.float32).at[:, :out_dim].set(p["b2"])

    return {
        "A": a.astype(jnp.bfloat16),     # bf16 weight streams: half the HBM bytes
        "c": c.astype(jnp.float32),
        "W2": w2p.astype(jnp.bfloat16),
        "b2": b2p,                       # f32, pads = -1e30 (must stay f32)
        "out_dim": out_dim,
    }


def _round_up(x, m):
    return ((x + m - 1) // m) * m


def _pick_tile(batch):
    if batch <= 16:
        return batch                     # toy batches: one step, overhead-bound
    # >= 2 grid steps so the "parallel" axis can shard across both TensorCores
    # on v7x, while each tile stays as large as possible (HBM/overhead-bound).
    return min(_round_up(pl.cdiv(batch, 2), 16), _TILE_CAP)


def deepfake_classifier(visual, audio, folded):
    # `visual` is accepted for interface parity with the PyTorch module; with a
    # length-1 attention sequence the output is mathematically independent of it.
    del visual
    B, E = audio.shape
    a, c, w2, b2 = folded["A"], folded["c"], folded["W2"], folded["b2"]
    hidden = a.shape[1]
    out_pad = w2.shape[1]
    out_dim = folded["out_dim"]

    audio_bf16 = audio.astype(jnp.bfloat16)              # halve the input stream

    tile_b = _pick_tile(B)
    grid = (pl.cdiv(B, tile_b),)
    # NOTE: on a partial final tile the out-of-range rows of the audio block are
    # uninitialized; any NaN/inf they produce stays in those rows (row softmax)
    # and Pallas drops their writeback, so valid rows are unaffected.

    def weight_spec(shape):
        return pl.BlockSpec(shape, lambda i: (0, 0))     # constant block index

    itemsize = lambda x: x.size * x.dtype.itemsize
    cost = pl.CostEstimate(
        flops=2 * B * (E * hidden + hidden * out_pad),
        transcendentals=B * out_pad,
        bytes_accessed=(itemsize(a) + itemsize(w2) + itemsize(c) + itemsize(b2)
                        + B * E * 2          # bf16 audio in
                        + B * out_pad * 2),  # bf16 padded probs out
    )

    out = pl.pallas_call(
        _fused_kernel,
        out_shape=jax.ShapeDtypeStruct((B, out_pad), jnp.bfloat16),
        grid=grid,
        in_specs=[
            pl.BlockSpec((tile_b, E), lambda i: (i, 0)),   # audio tile (pipelined)
            weight_spec((E, hidden)),                      # A  (bf16, stationary)
            weight_spec((1, hidden)),                      # c  (f32)
            weight_spec((hidden, out_pad)),                # W2 (bf16, stationary)
            weight_spec((1, out_pad)),                     # b2 (f32, pads = -1e30)
        ],
        out_specs=pl.BlockSpec((tile_b, out_pad), lambda i: (i, 0)),
        compiler_params=pltpu.CompilerParams(
            dimension_semantics=("parallel",)),
        cost_estimate=cost,
    )(audio_bf16, a, c, w2, b2)

    return out[:, :out_dim].astype(jnp.float32)


def init_params(key, visual_dim, audio_dim, hidden_dim, output_dim):
    """Original (unfolded) parameterization, weights pre-transposed to (in, out)."""
    assert visual_dim == audio_dim, "cross-attention requires matching embed dims"
    E = visual_dim
    ks = jax.random.split(key, 10)
    s = 0.02
    return {
        # MultiheadAttention in_proj (q/k kept only for reference parity) + biases
        "wq": s * jax.random.normal(ks[0], (E, E), jnp.float32),
        "wk": s * jax.random.normal(ks[1], (E, E), jnp.float32),
        "wv": s * jax.random.normal(ks[2], (E, E), jnp.float32),
        "b_in": s * jax.random.normal(ks[3], (3, E), jnp.float32),   # rows: q, k, v
        # out_proj
        "wo": s * jax.random.normal(ks[4], (E, E), jnp.float32),
        "bo": s * jax.random.normal(ks[5], (1, E), jnp.float32),
        # fc: Linear(visual_dim + audio_dim, hidden), Linear(hidden, output)
        "w1": s * jax.random.normal(ks[6], (2 * E, hidden_dim), jnp.float32),
        "b1": s * jax.random.normal(ks[7], (1, hidden_dim), jnp.float32),
        "w2": s * jax.random.normal(ks[8], (hidden_dim, output_dim), jnp.float32),
        "b2": s * jax.random.normal(ks[9], (1, output_dim), jnp.float32),
    }


def reference(visual, audio, p):
    """Pure-JAX reference of the PyTorch forward (softmax over 1 key == 1)."""
    del visual
    v = audio @ p["wv"] + p["b_in"][2]
    attn_out = v @ p["wo"] + p["bo"][0]
    fusion = jnp.concatenate([attn_out, audio], axis=1)
    h1 = jax.nn.relu(fusion @ p["w1"] + p["b1"][0])
    logits = h1 @ p["w2"] + p["b2"][0]
    return jax.nn.softmax(logits, axis=1)


if __name__ == "__main__":
    # Small shapes consistent with the module (embed dim a multiple of 8 heads).
    VISUAL_DIM = 256
    AUDIO_DIM = 256
    HIDDEN_DIM = 128
    OUTPUT_DIM = 2
    BATCH = 8

    key = jax.random.PRNGKey(0)
    k_vis, k_aud, k_par = jax.random.split(key, 3)
    visual = jax.random.normal(k_vis, (BATCH, VISUAL_DIM), jnp.float32)
    audio = jax.random.normal(k_aud, (BATCH, AUDIO_DIM), jnp.float32)
    params = init_params(k_par, VISUAL_DIM, AUDIO_DIM, HIDDEN_DIM, OUTPUT_DIM)

    folded = fold_params(params)      # one-time fold of the static weights
    out = deepfake_classifier(visual, audio, folded)
    jax.block_until_ready(out)

    assert out.shape == (BATCH, OUTPUT_DIM)
    ref = reference(visual, audio, params)
    if not jnp.allclose(out, ref, atol=2e-2, rtol=2e-2):
        raise AssertionError("Pallas kernel output does not match JAX reference")

    print("KERNEL_OK")
</pallas_src>

<mosaic_0001>
module attributes {stable_mosaic.version = 11 : i64} {
  func.func @_fused_kernel(%arg0: i32, %arg1: memref<8x256xbf16, #tpu.memory_space<vmem>>, %arg2: memref<256x128xbf16, #tpu.memory_space<vmem>>, %arg3: memref<1x128xf32, #tpu.memory_space<vmem>>, %arg4: memref<128x128xbf16, #tpu.memory_space<vmem>>, %arg5: memref<1x128xf32, #tpu.memory_space<vmem>>, %arg6: memref<8x128xbf16, #tpu.memory_space<vmem>>) attributes {dimension_semantics = [#tpu.dimension_semantics<parallel>], iteration_bounds = array<i64: 1>, scalar_prefetch = 0 : i64, scratch_operands = 0 : i64, tpu.core_type = #tpu.core_type<tc>, window_params = [{transform_indices = @transform_0, window_bounds = array<i64: 8, 256>}, {pipeline_mode = #tpu.pipeline_mode<synchronous>, transform_indices = @transform_1, window_bounds = array<i64: 256, 128>}, {pipeline_mode = #tpu.pipeline_mode<synchronous>, transform_indices = @transform_2, window_bounds = array<i64: 1, 128>}, {pipeline_mode = #tpu.pipeline_mode<synchronous>, transform_indices = @transform_3, window_bounds = array<i64: 128, 128>}, {pipeline_mode = #tpu.pipeline_mode<synchronous>, transform_indices = @transform_4, window_bounds = array<i64: 1, 128>}, {transform_indices = @transform_5, window_bounds = array<i64: 8, 128>}]} {
    %c0 = arith.constant 0 : index
    %c0_0 = arith.constant 0 : index
    %0 = vector.load %arg1[%c0, %c0_0] : memref<8x256xbf16, #tpu.memory_space<vmem>>, vector<8x256xbf16>
    %c0_1 = arith.constant 0 : index
    %c0_2 = arith.constant 0 : index
    %1 = vector.load %arg2[%c0_1, %c0_2] : memref<256x128xbf16, #tpu.memory_space<vmem>>, vector<256x128xbf16>
    %cst = arith.constant dense<0.000000e+00> : vector<8x128xf32>
    %2 = tpu.matmul %0, %1, %cst {dimension_numbers = #tpu.dot_dimension_numbers<[1], [0], [0], [1], [0, 0, 1, 1], [], []>} : vector<8x256xbf16>, vector<256x128xbf16>, vector<8x128xf32> -> vector<8x128xf32>
    %c0_3 = arith.constant 0 : index
    %c0_4 = arith.constant 0 : index
    %3 = vector.load %arg3[%c0_3, %c0_4] : memref<1x128xf32, #tpu.memory_space<vmem>>, vector<1x128xf32>
    %4 = vector.broadcast %3 : vector<1x128xf32> to vector<8x128xf32>
    %5 = arith.addf %2, %4 : vector<8x128xf32>
    %cst_5 = arith.constant 0.000000e+00 : f32
    %6 = vector.broadcast %cst_5 : f32 to vector<8x128xf32>
    %7 = arith.maximumf %5, %6 : vector<8x128xf32>
    %8 = arith.truncf %7 : vector<8x128xf32> to vector<8x128xbf16>
    %c0_6 = arith.constant 0 : index
    %c0_7 = arith.constant 0 : index
    %9 = vector.load %arg4[%c0_6, %c0_7] : memref<128x128xbf16, #tpu.memory_space<vmem>>, vector<128x128xbf16>
    %cst_8 = arith.constant dense<0.000000e+00> : vector<8x128xf32>
    %10 = tpu.matmul %8, %9, %cst_8 {dimension_numbers = #tpu.dot_dimension_numbers<[1], [0], [0], [1], [0, 0, 1, 1], [], []>} : vector<8x128xbf16>, vector<128x128xbf16>, vector<8x128xf32> -> vector<8x128xf32>
    %c0_9 = arith.constant 0 : index
    %c0_10 = arith.constant 0 : index
    %11 = vector.load %arg5[%c0_9, %c0_10] : memref<1x128xf32, #tpu.memory_space<vmem>>, vector<1x128xf32>
    %12 = vector.broadcast %11 : vector<1x128xf32> to vector<8x128xf32>
    %13 = arith.addf %10, %12 : vector<8x128xf32>
    %cst_11 = arith.constant dense<0xFF800000> : vector<8xf32>
    %14 = vector.multi_reduction <maximumf>, %13, %cst_11 [1] : vector<8x128xf32> to vector<8xf32>
    %15 = vector.shape_cast %14 : vector<8xf32> to vector<8x1xf32>
    %16 = vector.broadcast %15 : vector<8x1xf32> to vector<8x128xf32>
    %17 = arith.subf %13, %16 : vector<8x128xf32>
    %18 = math.exp %17 : vector<8x128xf32>
    %cst_12 = arith.constant dense<0.000000e+00> : vector<8xf32>
    %19 = vector.multi_reduction <add>, %18, %cst_12 [1] : vector<8x128xf32> to vector<8xf32>
    %20 = vector.shape_cast %19 : vector<8xf32> to vector<8x1xf32>
    %21 = tpu.reciprocal %20 {approx = true} : vector<8x1xf32> -> vector<8x1xf32>
    %22 = vector.broadcast %21 : vector<8x1xf32> to vector<8x128xf32>
    %23 = arith.mulf %18, %22 : vector<8x128xf32>
    %24 = arith.truncf %23 : vector<8x128xf32> to vector<8x128xbf16>
    %c0_13 = arith.constant 0 : index
    %c0_14 = arith.constant 0 : index
    %25 = vector.load %arg6[%c0_13, %c0_14] : memref<8x128xbf16, #tpu.memory_space<vmem>>, vector<8x128xbf16>
    tpu.vector_store %arg6[%c0_13, %c0_14], %24 {strides = array<i32>} : memref<8x128xbf16, #tpu.memory_space<vmem>>, vector<8x128xbf16>,
    return
  }
  func.func @transform_0(%arg0: i32) -> (i32, i32) {
    %c0_i32 = arith.constant 0 : i32
    %c0_i32_0 = arith.constant 0 : i32
    return %arg0, %c0_i32 : i32, i32
  }
  func.func @transform_1(%arg0: i32) -> (i32, i32) {
    %c0_i32 = arith.constant 0 : i32
    %c0_i32_0 = arith.constant 0 : i32
    %c0_i32_1 = arith.constant 0 : i32
    return %c0_i32, %c0_i32_0 : i32, i32
  }
  func.func @transform_2(%arg0: i32) -> (i32, i32) {
    %c0_i32 = arith.constant 0 : i32
    %c0_i32_0 = arith.constant 0 : i32
    %c0_i32_1 = arith.constant 0 : i32
    return %c0_i32, %c0_i32_0 : i32, i32
  }
  func.func @transform_3(%arg0: i32) -> (i32, i32) {
    %c0_i32 = arith.constant 0 : i32
    %c0_i32_0 = arith.constant 0 : i32
    %c0_i32_1 = arith.constant 0 : i32
    return %c0_i32, %c0_i32_0 : i32, i32
  }
  func.func @transform_4(%arg0: i32) -> (i32, i32) {
    %c0_i32 = arith.constant 0 : i32
    %c0_i32_0 = arith.constant 0 : i32
    %c0_i32_1 = arith.constant 0 : i32
    return %c0_i32, %c0_i32_0 : i32, i32
  }
  func.func @transform_5(%arg0: i32) -> (i32, i32) {
    %c0_i32 = arith.constant 0 : i32
    %c0_i32_0 = arith.constant 0 : i32
    return %arg0, %c0_i32 : i32, i32
  }
}

</mosaic_0001>

<bundles_post_ra>
// kernel: tpu_custom_call.1
= control target key start
LH: loop header
LB: loop body
LE: loop exit
PB: predicated region body
PF: predicated region fallthrough
CT: control target
= control target key end

     0   :  { %10 = vsyncpa [#allocation3], 0  ;;  %s652_s0 = inlined_call_operand.hbm [shape: bf16[8,256], index: 0, kind: input, shape index: {}]   ;;  %s653_s1 = inlined_call_operand.hbm [shape: bf16[256,128], index: 1, kind: input, shape index: {}]   ;;  %s654_s2 = inlined_call_operand.vmem [shape: f32[1,128], index: 2, kind: input, shape index: {}]   ;;  %s655_s3 = inlined_call_operand.hbm [shape: bf16[128,128], index: 3, kind: input, shape index: {}]   ;;  %s656_s4 = inlined_call_operand.vmem [shape: f32[1,128], index: 4, kind: input, shape index: {}]   ;;  %s657_s5 = inlined_call_operand.hbm [shape: bf16[8,128], index: 5, kind: output, shape index: {}]  }
   0x1   :  { %11 = vsyncpa [#allocation6], 0 }
   0x2   :  { %12 = vsyncpa [#allocation4], 0  ;;  %s587_s18 = smov [#allocation5]  }
   0x3   :  { %s28_s19 = sshll.u32 %s587_s18, 4  ;;  %s29_s19 = int_to_ptr.vmem [resolvable:$true] %s28_s19 }
   0x4   :  { %s509_s20 = scalar_lea.vmem %s29_s19, 2048  ;;  %p514_p1 = scmp.lt.s32.totalorder %s29_s19, %s29_s19 }
   0x5   :  { %p510_p0 = scmp.ne.s32.totalorder %s29_s19, %s509_s20  ;;  %p515_p2 = scmp.lt.s32.totalorder %s509_s20, %s509_s20 }
   0x7   :  { %p516_p3 = por %p515_p2, %p514_p1 }
   0x9   :  { %p517_p4 = pnand %p516_p3, %p510_p0 }
   0xb   :  { %520 = shalt.err (!%p517_p4)
}
   0xc   :  { %s588_s21 = smov 64   ;;  %s589_s22 = smov 4  }
   0xd   :  { %34 = dma.hbm_to_vmem [thread:$0]  %s653_s1, 2048, %s29_s19, [#allocation6], %s588_s21, %s588_s21, %s589_s22  }
   0xe   :  { %s590_s25 = smov [#allocation2]   ;;  %s591_s27 = smov [#allocation7]  }
   0xf   :  { %s19_s26 = sshll.u32 %s590_s25, 4  ;;  %s42_s28 = sshll.u32 %s591_s27, 4  ;;  %s20_s26 = int_to_ptr.vmem [resolvable:$true] %s19_s26  ;;  %s43_s28 = int_to_ptr.vmem [resolvable:$true] %s42_s28 }
  0x10   :  { %s529_s29 = scalar_lea.vmem %s20_s26, 128  ;;  %p534_p6 = scmp.lt.s32.totalorder %s20_s26, %s20_s26 }
  0x11   :  { %p530_p5 = scmp.ne.s32.totalorder %s20_s26, %s529_s29  ;;  %p535_p7 = scmp.lt.s32.totalorder %s529_s29, %s529_s29 }
  0x13   :  { %p536_p8 = por %p535_p7, %p534_p6 }
  0x15   :  { %p537_p9 = pnand %p536_p8, %p530_p5 }
  0x17   :  { %540 = shalt.err (!%p537_p9)
}
  0x18   :  { %22 = dma.hbm_to_vmem [thread:$0]  %s652_s0, 128, %s20_s26, [#allocation3]  }
  0x19   :  { %s549_s7 = scalar_lea.vmem %s43_s28, 1024  ;;  %p554_p11 = scmp.lt.s32.totalorder %s43_s28, %s43_s28 }
  0x1a   :  { %p550_p10 = scmp.ne.s32.totalorder %s43_s28, %s549_s7  ;;  %p555_p12 = scmp.lt.s32.totalorder %s549_s7, %s549_s7 }
  0x1c   :  { %p556_p13 = por %p555_p12, %p554_p11 }
  0x1e   :  { %p557_p0 = pnand %p556_p13, %p550_p10 }
  0x20   :  { %560 = shalt.err (!%p557_p0)
}
  0x21   :  { %48 = dma.hbm_to_vmem [thread:$0]  %s655_s3, 1024, %s43_s28, [#allocation6], %s588_s21, %s588_s21, %s589_s22  }
  0x22   :  { %581 = dma.done.wait [#allocation3], 128  }
  0x23   :  { %582 = vsyncadd [#allocation3], 4294967168 }
  0x24   :  { %583 = dma.done.wait [#allocation6], 3072  }
  0x25   :  { %584 = vsyncadd [#allocation6], 4294964224  ;;  %v592_v0 = vmov 0.0   ;;  %v471_v1 = vld [vmem:[#allocation5 + $0x78] sm:$0xff]   ;;  %v473_v3 = vld [vmem:[#allocation5 + $0x70] sm:$0xff]   ;;  %vm593_vm0 = vmmov 0  }
  0x26   :  { %443 = vmatprep.subr.bf16.mxu1 %v592_v0  ;;  %v472_v2 = vld [vmem:[#allocation5 + $0x38] sm:$0xff]   ;;  %412 = vmatprep.subr.bf16.mxu0 %v471_v1  ;;  %v474_v4 = vld [vmem:[#allocation5 + $0x30] sm:$0xff]   ;;  %v475_v5 = vld [vmem:[#allocation5 + $0x68] sm:$0xff]  }
  0x27   :  { %413 = vmatpush3.bf16.msra.mxu0 %v472_v2  ;;  %v476_v6 = vld [vmem:[#allocation5 + $0x28] sm:$0xff]   ;;  %v477_v7 = vld [vmem:[#allocation5 + $0x60] sm:$0xff]   ;;  %v479_v9 = vld [vmem:[#allocation5 + $0x58] sm:$0xff]   ;;  %459 = vmatprep.mubr.msk.bf16.mxu1 %vm593_vm0, %v592_v0 }
  0x28   :  { %414 = vmatprep.subr.bf16.mxu0 %v473_v3  ;;  %v478_v8 = vld [vmem:[#allocation5 + $0x20] sm:$0xff]   ;;  %v480_v10 = vld [vmem:[#allocation5 + $0x18] sm:$0xff]   ;;  %v481_v11 = vld [vmem:[#allocation5 + $0x50] sm:$0xff]  }
  0x29   :  { %v61_v12 = vld [vmem:[#allocation2] sm:$0xff]  ;;  %v482_v15 = vld [vmem:[#allocation5 + $0x10] sm:$0xff]   ;;  %v483_v16 = vld [vmem:[#allocation5 + $0x48] sm:$0xff]  }
  0x2a   :  { %v386_v13 = vcombine.high %v61_v12, %v61_v12  ;;  %v489_v14 = vld [vmem:[#allocation7 + $0x38] sm:$0xff]   ;;  %v490_v17 = vld [vmem:[#allocation7 + $0x30] sm:$0xff]   ;;  %v484_v18 = vld [vmem:[#allocation5 + $0x8] sm:$0xff]   ;;  %v385_v23 = vcombine.low %v61_v12, %v61_v12 }
  0x2b   :  { %415 = vmatpush3.bf16.msra.mxu0 %v474_v4  ;;  %444 = vmatpush3.bf16.msra.mxu1 %v489_v14  ;;  %v485_v19 = vld [vmem:[#allocation5 + $0x40] sm:$0xff]   ;;  %v491_v20 = vld [vmem:[#allocation7 + $0x28] sm:$0xff]   ;;  %v493_v24 = vld [vmem:[#allocation7 + $0x18] sm:$0xff]  }
  0x2c   :  { %416 = vmatprep.subr.bf16.mxu0 %v475_v5  ;;  %236 = vmatprep.mubr.bf16.mxu0 %v386_v13  ;;  %v486_v21 = vld [vmem:[#allocation5] sm:$0xff]   ;;  %v494_v25 = vld [vmem:[#allocation7 + $0x10] sm:$0xff]   ;;  %v495_v26 = vld [vmem:[#allocation7 + $0x8] sm:$0xff]  }
  0x2d   :  { %445 = vmatprep.subr.bf16.mxu1 %v592_v0  ;;  %v492_v22 = vld [vmem:[#allocation7 + $0x20] sm:$0xff]   ;;  %v384_v29 = vld [vmem:[%s654_s2] ss:$0 sm:$0xff]  ;;  %s594_s2 = smov [#allocation8]  }
  0x2e   :  { %v496_v27 = vld [vmem:[#allocation7] sm:$0xff]   ;;  %v403_v37 = vld [vmem:[%s656_s4] ss:$0 sm:$0xff]  ;;  %s374_s11 = sshll.u32 %s594_s2, 4  ;;  %s375_s11 = int_to_ptr.vmem [resolvable:$true] %s374_s11 }
  0x2f   :  { %417 = vmatpush3.bf16.msra.mxu0 %v476_v6  ;;  %446 = vmatpush3.bf16.msra.mxu1 %v490_v17  ;;  %s561_s4 = scalar_lea.vmem %s375_s11, 64  ;;  %p566_p2 = scmp.lt.s32.totalorder %s375_s11, %s375_s11 }
  0x30   :  { %418 = vmatprep.subr.bf16.mxu0 %v477_v7  ;;  %447 = vmatprep.subr.bf16.mxu1 %v592_v0  ;;  %p562_p1 = scmp.ne.s32.totalorder %s375_s11, %s561_s4  ;;  %p567_p3 = scmp.lt.s32.totalorder %s561_s4, %s561_s4 }
  0x32   :  { %p568_p4 = por %p567_p3, %p566_p2 }
  0x33   :  { %419 = vmatpush3.bf16.msra.mxu0 %v478_v8  ;;  %448 = vmatpush3.bf16.msra.mxu1 %v491_v20 }
  0x34   :  { %420 = vmatprep.subr.bf16.mxu0 %v479_v9  ;;  %449 = vmatprep.subr.bf16.mxu1 %v592_v0  ;;  %p569_p5 = pnand %p568_p4, %p562_p1 }
  0x37   :  { %421 = vmatpush3.bf16.msra.mxu0 %v480_v10  ;;  %450 = vmatpush3.bf16.msra.mxu1 %v492_v22 }
  0x38   :  { %422 = vmatprep.subr.bf16.mxu0 %v481_v11  ;;  %451 = vmatprep.subr.bf16.mxu1 %v592_v0 }
  0x3b   :  { %423 = vmatpush3.bf16.msra.mxu0 %v482_v15  ;;  %452 = vmatpush3.bf16.msra.mxu1 %v493_v24 }
  0x3c   :  { %424 = vmatprep.subr.bf16.mxu0 %v483_v16  ;;  %453 = vmatprep.subr.bf16.mxu1 %v592_v0 }
  0x3f   :  { %425 = vmatpush3.bf16.msra.mxu0 %v484_v18  ;;  %454 = vmatpush3.bf16.msra.mxu1 %v494_v25 }
  0x40   :  { %426 = vmatprep.subr.bf16.mxu0 %v485_v19  ;;  %455 = vmatprep.subr.bf16.mxu1 %v592_v0 }
  0x43   :  { %427 = vmatpush3.bf16.msra.mxu0 %v486_v21  ;;  %456 = vmatpush3.bf16.msra.mxu1 %v495_v26 }
  0x44   :  { %457 = vmatprep.subr.bf16.mxu1 %v592_v0 }
  0x46   :  { %237 = vmatmul.mubr.bf16.vlgmr.msra.gmra.mxu0 %v385_v23 }
  0x47   :  { %458 = vmatpush3.bf16.msra.mxu1 %v496_v27 }
 0x106   :  { %v428_v28 = vpop.f32.mrf.mxu0 }
 0x108   :  { %v429_v30 = vpop.f32.mrf.mxu0 }
 0x109   :  { %v430_v31 = vadd.f32 %v429_v30, %v428_v28 }
 0x10a   :  { %v431_v32 = vpop.f32.mrf.mxu0 }
 0x10b   :  { %v239_v33 = vadd.f32 %v430_v31, %v384_v29 }
 0x10c   :  { %v432_v34 = vpop.f32.mrf.mxu0 }
 0x10d   :  { %v244_v35 = vmax.f32 %v239_v33, 0.0 }
 0x10f   :  { %v245_v36 = vpack.c.bf16 %v244_v35, %v244_v35 }
 0x111   :  { %460 = vmatmul.mubr.bf16.vlgmr.msra.gmra.mxu1 %v245_v36 }
 0x1d1   :  { %v351_v38 = vpop.f32.mrf.mxu1 }
 0x1d2   :  { %v352_v39 = vadd.f32 %v403_v37, %v351_v38 }
 0x1d3   :  { %v461_v40 = vpop.f32.mrf.mxu1 }
 0x1d4   :  { %357 = vmax.xlane.f32.xlu0 %v352_v39 }
 0x1d5   :  { %v354_v41 = vpop.f32.mrf.mxu1 }
 0x1d7   :  { %v462_v42 = vpop.f32.mrf.mxu1 }
 0x25d   :  { %v358_v43 = vpop.xlane.xlu0 %357 }
 0x25e   :  { %v359_v44 = vsub.f32 %v352_v39, %v358_v43 }
 0x260   :  { %v360_v45 = vmul.f32 1.442695, %v359_v44 }
 0x262   :  { %497 = vpow2.f32 %v360_v45 }
 0x26f   :  { %v498_v46 = vpop.eup %497 }
 0x270   :  { %362 = vadd.xlane.f32.xlu0 %v498_v46 }
 0x2f9   :  { %v363_v47 = vpop.xlane.xlu0 %362 }
 0x2fa   :  { %499 = vrcp.f32 %v363_v47 }
 0x307   :  { %v500_v48 = vpop.eup %499 }
 0x308   :  { %v365_v49 = vmul.f32 %v500_v48, %v498_v46 }
 0x30a   :  { %v366_v50 = vpack.c.bf16 %v365_v49, %v365_v49 }
 0x30c   :  { %367 = vst [vmem:[#allocation8] sm:$0xf] %v366_v50 }
 0x30d   :  { %572 = shalt.err (!%p569_p5)
}
 0x30e   :  { %377 = dma.vmem_to_hbm [thread:$0]  %s375_s11, 64, %s657_s5, [#allocation4]  }
 0x30f   :  { %585 = dma.done.wait [#allocation4], 64  }
 0x310   :  { %586 = vsyncadd [#allocation4], 4294967232 }
 0x311   :  { %381 = vsyncpa [#allocation3], 1 }
 0x312   :  { %382 = vsyncpa [#allocation6], 1 }
 0x313   :  { %383 = vsyncpa [#allocation4], 1 }

</bundles_post_ra>
